<compile_context>
chip_gen: v5e
topology: v5e:2x2
jax: 0.10.0
libtpu: 0.0.40
codegen_flags: <defaults>
</compile_context>

<pallas_src>
import functools
import numpy as np
import jax
import jax.numpy as jnp
from jax.experimental import pallas as pl
from jax.experimental.pallas import tpu as pltpu


NEG_SLOPE = 0.2


# --------------------------------------------------------------------------
# Kernels
# --------------------------------------------------------------------------
def encoder_kernel_resident(x_ref, w_ref, bw_ref, out_ref):
    # x_ref   : (TB, D_IN)   VMEM, f32   (cast to bf16 in-kernel, hidden under DMA)
    # w_ref   : (D_IN, W_DIM) VMEM, bf16 (constant block index -> resident)
    # bw_ref  : (2, W_DIM)   VMEM, f32   (row 0 = bias, row 1 = w_avg)
    # out_ref : (TB, W_DIM)  VMEM, f32
    x = x_ref[...].astype(jnp.bfloat16)
    z = jnp.dot(x, w_ref[...], preferred_element_type=jnp.float32)
    z = z + bw_ref[0:1, :]                       # + bias
    z = jnp.where(z >= 0, z, NEG_SLOPE * z)      # LeakyReLU(0.2)
    out_ref[...] = (z + bw_ref[1:2, :]).astype(out_ref.dtype)   # + w_avg


def encoder_kernel_ktiled(x_ref, w_ref, bw_ref, out_ref, acc_ref):
    # x_ref   : (TB, TK)      VMEM, f32
    # w_ref   : (TK, W_DIM)   VMEM, bf16
    # bw_ref  : (2, W_DIM)    VMEM, f32
    # out_ref : (TB, W_DIM)   VMEM, f32
    # acc_ref : (TB, W_DIM)   VMEM, f32 scratch accumulator
    k = pl.program_id(1)

    @pl.when(k == 0)
    def _init():
        acc_ref[...] = jnp.zeros_like(acc_ref)

    x = x_ref[...].astype(jnp.bfloat16)
    acc_ref[...] += jnp.dot(x, w_ref[...], preferred_element_type=jnp.float32)

    @pl.when(k == pl.num_programs(1) - 1)
    def _epilogue():
        z = acc_ref[...] + bw_ref[0:1, :]
        z = jnp.where(z >= 0, z, NEG_SLOPE * z)
        out_ref[...] = (z + bw_ref[1:2, :]).astype(out_ref.dtype)


# --------------------------------------------------------------------------
# Helpers
# --------------------------------------------------------------------------
def _tpu_hw():
    """(vmem_capacity_bytes, is_megacore) with safe fallbacks off-TPU."""
    vmem_cap = 128 * 1024 * 1024
    megacore = False
    try:
        info = pltpu.get_tpu_info()
        vmem_cap = int(getattr(info, "vmem_capacity_bytes", vmem_cap))
        # v7x: 64 MiB VMEM per TensorCore and 2 TCs/chip -> want >=2 parallel
        # batch grid steps so both cores get work.  v5e/v6e: 128 MiB, 1 TC.
        megacore = vmem_cap < 100 * 1024 * 1024
    except Exception:
        pass
    return vmem_cap, megacore


def _round_up(x, m):
    return ((x + m - 1) // m) * m


def _pick_batch_tile(batch, desired, *, prefer_two_steps=False):
    """Largest multiple-of-8 tile <= desired dividing batch.

    On megacore chips (v7x) prefer a tile giving >=2 grid steps so the
    'parallel' batch axis can be split across both TensorCores.  On single-TC
    chips take the largest legal tile."""
    cands = [t for t in range(8, min(desired, batch) + 1, 8) if batch % t == 0]
    if not cands:
        return batch  # tiny / odd batch: full-extent block is legal
    if prefer_two_steps:
        two_step = [t for t in cands if batch // t >= 2]
        if two_step:
            return max(two_step)
    return max(cands)


# --------------------------------------------------------------------------
# Forward wrapper
# --------------------------------------------------------------------------
def encoder_forward(x_nchw, w, b, w_avg, *, num_ws=14, tb=512, tk=4096,
                    force_k_tiling=False):
    """x_nchw: (B, C, H, W) float32.  w: (C*H*W, W_DIM) ideally pre-cast bf16.
    Returns (B, num_ws, W_DIM) float32 (unsqueeze/repeat done as a lazy
    broadcast outside the kernel)."""
    B = x_nchw.shape[0]
    d_in = int(np.prod(x_nchw.shape[1:]))
    w_dim = w.shape[1]

    vmem_cap, megacore = _tpu_hw()

    # Flatten is a contiguous, metadata-only reshape (== torch.flatten(x, 1)).
    # x stays f32; the bf16 cast happens inside the kernel (no extra HBM pass).
    x_flat = x_nchw.reshape(B, d_in)

    if w.dtype != jnp.bfloat16:
        # TODO(synk): cast once at weight-load time; this per-call cast is only
        # a fallback so the wrapper accepts f32 weights.
        w = w.astype(jnp.bfloat16)

    # Pack the two grid-invariant (1, W_DIM) operands into one (2, W_DIM) input.
    bw = jnp.stack(
        [b.reshape(w_dim).astype(jnp.float32),
         w_avg.reshape(w_dim).astype(jnp.float32)],
        axis=0,
    )

    tb_eff = _pick_batch_tile(B, tb, prefer_two_steps=megacore)

    # ---- path selection: keep W resident in VMEM when it fits comfortably ----
    w_bytes = d_in * w_dim * 2                      # bf16 resident weight
    resident_need = (
        2 * tb_eff * d_in * 4                       # x tile (f32), double-buffered
        + 2 * w_bytes                               # W (count 2x for safety)
        + 2 * 2 * w_dim * 4                         # bias + w_avg
        + 2 * tb_eff * w_dim * 4                    # output tile
    )
    use_resident = (
        not force_k_tiling
        and w_bytes <= vmem_cap // 8
        and resident_need <= (vmem_cap * 5) // 8
    )

    if use_resident:
        grid = (B // tb_eff,)
        vmem_limit = int(min(vmem_cap * 3 // 4,
                             max(3 * resident_need // 2, 16 << 20)))
        out = pl.pallas_call(
            encoder_kernel_resident,
            out_shape=jax.ShapeDtypeStruct((B, w_dim), jnp.float32),
            grid_spec=pltpu.PrefetchScalarGridSpec(
                num_scalar_prefetch=0,
                grid=grid,
                in_specs=[
                    pl.BlockSpec((tb_eff, d_in), lambda i: (i, 0)),   # x tile
                    pl.BlockSpec((d_in, w_dim), lambda i: (0, 0)),    # W resident
                    pl.BlockSpec((2, w_dim), lambda i: (0, 0)),       # bias + w_avg
                ],
                out_specs=pl.BlockSpec((tb_eff, w_dim), lambda i: (i, 0)),
            ),
            compiler_params=pltpu.CompilerParams(
                dimension_semantics=("parallel",),
                vmem_limit_bytes=vmem_limit,
            ),
        )(x_flat, w, bw)
    else:
        # ---- K-tiled path: pad d_in so the reduction axis is always tiled ----
        tk_eff = min(tk, _round_up(d_in, 128))
        tk_eff = max(128, (tk_eff // 128) * 128)
        d_pad = _round_up(d_in, tk_eff)
        if d_pad != d_in:
            x_flat = jnp.pad(x_flat, ((0, 0), (0, d_pad - d_in)))
            w_k = jnp.pad(w, ((0, d_pad - d_in), (0, 0)))
        else:
            w_k = w

        grid = (B // tb_eff, d_pad // tk_eff)       # (parallel batch, arbitrary K)
        ktiled_need = (
            2 * tb_eff * tk_eff * 4                 # x tile (f32), double-buffered
            + 2 * tk_eff * w_dim * 2                # W K-tile (bf16), double-buffered
            + 2 * 2 * w_dim * 4                     # bias + w_avg
            + 2 * tb_eff * w_dim * 4                # output tile
            + tb_eff * w_dim * 4                    # f32 accumulator scratch
        )
        vmem_limit = int(min(vmem_cap * 3 // 4,
                             max(3 * ktiled_need // 2, 16 << 20)))
        out = pl.pallas_call(
            encoder_kernel_ktiled,
            out_shape=jax.ShapeDtypeStruct((B, w_dim), jnp.float32),
            grid_spec=pltpu.PrefetchScalarGridSpec(
                num_scalar_prefetch=0,
                grid=grid,
                in_specs=[
                    pl.BlockSpec((tb_eff, tk_eff), lambda i, k: (i, k)),  # x tile
                    pl.BlockSpec((tk_eff, w_dim), lambda i, k: (k, 0)),   # W K-tile
                    pl.BlockSpec((2, w_dim), lambda i, k: (0, 0)),        # bias+w_avg
                ],
                out_specs=pl.BlockSpec((tb_eff, w_dim), lambda i, k: (i, 0)),
                scratch_shapes=[pltpu.VMEM((tb_eff, w_dim), jnp.float32)],
            ),
            compiler_params=pltpu.CompilerParams(
                dimension_semantics=("parallel", "arbitrary"),
                vmem_limit_bytes=vmem_limit,
            ),
        )(x_flat, w_k, bw)

    # unsqueeze(1).repeat(1, num_ws, 1): lazy broadcast outside the kernel
    # (14x less HBM write traffic from the kernel itself).
    return jnp.broadcast_to(out[:, None, :], (B, num_ws, w_dim))


# --------------------------------------------------------------------------
# Demo / self-test
# --------------------------------------------------------------------------
if __name__ == "__main__":
    # Small, deterministic shapes consistent with the module's forward.
    B, C, H, W_SP = 32, 4, 16, 16        # NCHW input
    D_IN = C * H * W_SP                  # 1024
    W_DIM = 128                          # latent / w dimension
    NUM_WS = 14

    key = jax.random.PRNGKey(0)
    kx, kw, kb, ka = jax.random.split(key, 4)

    x = jax.random.normal(kx, (B, C, H, W_SP), dtype=jnp.float32)
    w = jax.random.normal(kw, (D_IN, W_DIM), dtype=jnp.float32) * 0.02
    b = jax.random.normal(kb, (W_DIM,), dtype=jnp.float32) * 0.01
    w_avg = jax.random.normal(ka, (W_DIM,), dtype=jnp.float32)   # registered buffer

    # Weight cast done ONCE, outside the per-call path (inference caching).
    w_bf16 = w.astype(jnp.bfloat16)

    # Host reference of the same forward pass (same bf16 operand rounding the
    # kernel uses; accumulation in f32 on both sides).
    xb = np.asarray(x.reshape(B, D_IN).astype(jnp.bfloat16).astype(jnp.float32))
    wb = np.asarray(w_bf16.astype(jnp.float32))
    z_ref = xb @ wb + np.asarray(b)[None, :]
    z_ref = np.where(z_ref >= 0, z_ref, NEG_SLOPE * z_ref)
    ws_ref = z_ref + np.asarray(w_avg)[None, :]
    ref = np.broadcast_to(ws_ref[:, None, :], (B, NUM_WS, W_DIM))

    # 1) Resident-weight path (W fits in VMEM: 1024*128*2 = 256 KiB).
    out = encoder_forward(x, w_bf16, b, w_avg, num_ws=NUM_WS)
    out = jax.block_until_ready(out)
    assert out.shape == (B, NUM_WS, W_DIM)
    np.testing.assert_allclose(np.asarray(out), ref, rtol=1e-2, atol=1e-2)

    # 2) K-tiled path (forced), including the d_in zero-padding branch
    #    (tk=384 -> d_in padded 1024 -> 1152, 3 reduction steps).
    out2 = encoder_forward(x, w_bf16, b, w_avg, num_ws=NUM_WS,
                           force_k_tiling=True, tk=384)
    out2 = jax.block_until_ready(out2)
    np.testing.assert_allclose(np.asarray(out2), ref, rtol=1e-2, atol=1e-2)

    print("KERNEL_OK")
</pallas_src>

<mosaic_0001>
module attributes {stable_mosaic.version = 11 : i64} {
  func.func @encoder_kernel_resident(%arg0: i32, %arg1: memref<32x1024xf32, #tpu.memory_space<vmem>>, %arg2: memref<1024x128xbf16, #tpu.memory_space<vmem>>, %arg3: memref<2x128xf32, #tpu.memory_space<vmem>>, %arg4: memref<32x128xf32, #tpu.memory_space<vmem>>) attributes {dimension_semantics = [#tpu.dimension_semantics<parallel>], iteration_bounds = array<i64: 1>, scalar_prefetch = 0 : i64, scratch_operands = 0 : i64, tpu.core_type = #tpu.core_type<tc>, window_params = [{transform_indices = @transform_0, window_bounds = array<i64: 32, 1024>}, {pipeline_mode = #tpu.pipeline_mode<synchronous>, transform_indices = @transform_1, window_bounds = array<i64: 1024, 128>}, {pipeline_mode = #tpu.pipeline_mode<synchronous>, transform_indices = @transform_2, window_bounds = array<i64: 2, 128>}, {transform_indices = @transform_3, window_bounds = array<i64: 32, 128>}]} {
    %c0 = arith.constant 0 : index
    %c0_0 = arith.constant 0 : index
    %0 = vector.load %arg1[%c0, %c0_0] : memref<32x1024xf32, #tpu.memory_space<vmem>>, vector<32x1024xf32>
    %1 = arith.truncf %0 : vector<32x1024xf32> to vector<32x1024xbf16>
    %c0_1 = arith.constant 0 : index
    %c0_2 = arith.constant 0 : index
    %2 = vector.load %arg2[%c0_1, %c0_2] : memref<1024x128xbf16, #tpu.memory_space<vmem>>, vector<1024x128xbf16>
    %cst = arith.constant dense<0.000000e+00> : vector<32x128xf32>
    %3 = tpu.matmul %1, %2, %cst {dimension_numbers = #tpu.dot_dimension_numbers<[1], [0], [0], [1], [0, 0, 1, 1], [], []>} : vector<32x1024xbf16>, vector<1024x128xbf16>, vector<32x128xf32> -> vector<32x128xf32>
    %c0_3 = arith.constant 0 : index
    %c0_4 = arith.constant 0 : index
    %4 = vector.load %arg3[%c0_3, %c0_4] : memref<2x128xf32, #tpu.memory_space<vmem>>, vector<1x128xf32>
    %5 = vector.broadcast %4 : vector<1x128xf32> to vector<32x128xf32>
    %6 = arith.addf %3, %5 : vector<32x128xf32>
    %cst_5 = arith.constant 0.000000e+00 : f32
    %7 = vector.broadcast %cst_5 : f32 to vector<32x128xf32>
    %8 = arith.cmpf oge, %6, %7 : vector<32x128xf32>
    %cst_6 = arith.constant 2.000000e-01 : f32
    %9 = vector.broadcast %cst_6 : f32 to vector<32x128xf32>
    %10 = arith.mulf %9, %6 : vector<32x128xf32>
    %11 = arith.select %8, %6, %10 : vector<32x128xi1>, vector<32x128xf32>
    %c1 = arith.constant 1 : index
    %c0_7 = arith.constant 0 : index
    %12 = vector.load %arg3[%c1, %c0_7] : memref<2x128xf32, #tpu.memory_space<vmem>>, vector<1x128xf32>
    %13 = vector.broadcast %12 : vector<1x128xf32> to vector<32x128xf32>
    %14 = arith.addf %11, %13 : vector<32x128xf32>
    %c0_8 = arith.constant 0 : index
    %c0_9 = arith.constant 0 : index
    %15 = vector.load %arg4[%c0_8, %c0_9] : memref<32x128xf32, #tpu.memory_space<vmem>>, vector<32x128xf32>
    tpu.vector_store %arg4[%c0_8, %c0_9], %14 {strides = array<i32>} : memref<32x128xf32, #tpu.memory_space<vmem>>, vector<32x128xf32>,
    return
  }
  func.func @transform_0(%arg0: i32) -> (i32, i32) {
    %c0_i32 = arith.constant 0 : i32
    %c0_i32_0 = arith.constant 0 : i32
    return %arg0, %c0_i32 : i32, i32
  }
  func.func @transform_1(%arg0: i32) -> (i32, i32) {
    %c0_i32 = arith.constant 0 : i32
    %c0_i32_0 = arith.constant 0 : i32
    %c0_i32_1 = arith.constant 0 : i32
    return %c0_i32, %c0_i32_0 : i32, i32
  }
  func.func @transform_2(%arg0: i32) -> (i32, i32) {
    %c0_i32 = arith.constant 0 : i32
    %c0_i32_0 = arith.constant 0 : i32
    %c0_i32_1 = arith.constant 0 : i32
    return %c0_i32, %c0_i32_0 : i32, i32
  }
  func.func @transform_3(%arg0: i32) -> (i32, i32) {
    %c0_i32 = arith.constant 0 : i32
    %c0_i32_0 = arith.constant 0 : i32
    return %arg0, %c0_i32 : i32, i32
  }
}

</mosaic_0001>

<bundles_post_ra>
// kernel: tpu_custom_call.1
= control target key start
LH: loop header
LB: loop body
LE: loop exit
PB: predicated region body
PF: predicated region fallthrough
CT: control target
= control target key end

     0   :  { %8 = vsyncpa [#allocation3], 0  ;;  %s1290_s0 = inlined_call_operand.hbm [shape: f32[32,1024], index: 0, kind: input, shape index: {}]   ;;  %s1291_s1 = inlined_call_operand.hbm [shape: bf16[1024,128], index: 1, kind: input, shape index: {}]   ;;  %s1292_s2 = inlined_call_operand.hbm [shape: f32[2,128], index: 2, kind: input, shape index: {}]   ;;  %s1293_s3 = inlined_call_operand.hbm [shape: f32[32,128], index: 3, kind: output, shape index: {}]  }
   0x1   :  { %9 = vsyncpa [#allocation6], 0  ;;  %s28_s14 = sshll.u32 %s1291_s1, 4  ;;  %s29_s14 = int_to_ptr.hbm [resolvable:$true] %s28_s14 }
   0x2   :  { %10 = vsyncpa [#allocation4], 0  ;;  %s1249_s15 = smov [#allocation5]   ;;  %s15_s19 = sshll.u32 %s1290_s0, 4  ;;  %s16_s19 = int_to_ptr.hbm [resolvable:$true] %s15_s19 }
   0x3   :  { %s30_s16 = sshll.u32 %s1249_s15, 4  ;;  %s1250_s20 = smov 64   ;;  %s31_s16 = int_to_ptr.vmem [resolvable:$true] %s30_s16 }
   0x4   :  { %s1251_s21 = smov 4   ;;  %s1252_s22 = smov [#allocation2]  }
   0x5   :  { %36 = dma.hbm_to_vmem [thread:$0]  %s29_s14, 8192, %s31_s16, [#allocation6], %s1250_s20, %s1250_s20, %s1251_s21  }
   0x6   :  { %s17_s23 = sshll.u32 %s1252_s22, 4  ;;  %s42_s1 = sshll.u32 %s1292_s2, 4  ;;  %s18_s23 = int_to_ptr.vmem [resolvable:$true] %s17_s23  ;;  %s43_s1 = int_to_ptr.hbm [resolvable:$true] %s42_s1 }
   0x7   :  { %s1253_s26 = smov 1024   ;;  %s1254_s27 = smov [#allocation7]  }
   0x8   :  { %23 = dma.hbm_to_vmem [thread:$0]  %s16_s19, 4096, %s18_s23, [#allocation3], %s1253_s26, %s1253_s26, %s1250_s20  }
   0x9   :  { %s44_s28 = sshll.u32 %s1254_s27, 4  ;;  %s45_s28 = int_to_ptr.vmem [resolvable:$true] %s44_s28 }
   0xa   :  { %47 = dma.hbm_to_vmem [thread:$0]  %s43_s1, 32, %s45_s28, [#allocation6]  }
   0xb   :  { %1243 = dma.done.wait [#allocation3], 4096  }
   0xc   :  { %1244 = vsyncadd [#allocation3], 4294963200 }
   0xd   :  { %1245 = dma.done.wait [#allocation6], 8224  }
   0xe   :  { %1246 = vsyncadd [#allocation6], 4294959072  ;;  %v1079_v0 = vld [vmem:[#allocation5 + $0x38] sm:$0xff]  ;;  %v1078_v4 = vld [vmem:[#allocation5 + $0x30] sm:$0xff]  ;;  %s1255_s0 = smov [#allocation8]   ;;  %s802_s4 = sshll.u32 %s1293_s3, 4  ;;  %s803_s4 = int_to_ptr.hbm [resolvable:$true] %s802_s4 }
   0xf   :  { %v1087_v1 = vld [vmem:[#allocation5 + $0x78] sm:$0xff]  ;;  %622 = vmatpush.bf16.msra.mxu0 %v1079_v0  ;;  %v1086_v5 = vld [vmem:[#allocation5 + $0x70] sm:$0xff]  ;;  %v1077_v8 = vld [vmem:[#allocation5 + $0x28] sm:$0xff]  ;;  %s800_s2 = sshll.u32 %s1255_s0, 4  ;;  %s1256_s5 = smov 128   ;;  %s801_s2 = int_to_ptr.vmem [resolvable:$true] %s800_s2 }
  0x10   :  { %v1095_v2 = vld [vmem:[#allocation5 + $0xb8] sm:$0xff]  ;;  %641 = vmatpush.bf16.msra.mxu1 %v1087_v1  ;;  %v1094_v6 = vld [vmem:[#allocation5 + $0xb0] sm:$0xff]  ;;  %v1085_v9 = vld [vmem:[#allocation5 + $0x68] sm:$0xff]  ;;  %s1257_s6 = smov 8  }
  0x11   :  { %v1103_v3 = vld [vmem:[#allocation5 + $0xf8] sm:$0xff]  ;;  %660 = vmatpush.bf16.msra.mxu2 %v1095_v2  ;;  %v1102_v7 = vld [vmem:[#allocation5 + $0xf0] sm:$0xff]  ;;  %v1093_v10 = vld [vmem:[#allocation5 + $0xa8] sm:$0xff] }
  0x12   :  { %679 = vmatpush.bf16.msra.mxu3 %v1103_v3  ;;  %v1101_v11 = vld [vmem:[#allocation5 + $0xe8] sm:$0xff]  ;;  %v1076_v12 = vld [vmem:[#allocation5 + $0x20] sm:$0xff]  ;;  %v1075_v16 = vld [vmem:[#allocation5 + $0x18] sm:$0xff] }
  0x13   :  { %623 = vmatpush.bf16.msra.mxu0 %v1078_v4  ;;  %v1084_v13 = vld [vmem:[#allocation5 + $0x60] sm:$0xff]  ;;  %v1083_v17 = vld [vmem:[#allocation5 + $0x58] sm:$0xff]  ;;  %v1074_v20 = vld [vmem:[#allocation5 + $0x10] sm:$0xff] }
  0x14   :  { %642 = vmatpush.bf16.msra.mxu1 %v1086_v5  ;;  %v1092_v14 = vld [vmem:[#allocation5 + $0xa0] sm:$0xff]  ;;  %v1091_v18 = vld [vmem:[#allocation5 + $0x98] sm:$0xff]  ;;  %v1082_v21 = vld [vmem:[#allocation5 + $0x50] sm:$0xff] }
  0x15   :  { %661 = vmatpush.bf16.msra.mxu2 %v1094_v6  ;;  %v1100_v15 = vld [vmem:[#allocation5 + $0xe0] sm:$0xff]  ;;  %v1099_v19 = vld [vmem:[#allocation5 + $0xd8] sm:$0xff]  ;;  %v1090_v22 = vld [vmem:[#allocation5 + $0x90] sm:$0xff] }
  0x16   :  { %680 = vmatpush.bf16.msra.mxu3 %v1102_v7  ;;  %v1098_v23 = vld [vmem:[#allocation5 + $0xd0] sm:$0xff]  ;;  %v1073_v24 = vld [vmem:[#allocation5 + $0x8] sm:$0xff]  ;;  %v1072_v28 = vld [vmem:[#allocation5] sm:$0xff] }
  0x17   :  { %624 = vmatpush.bf16.msra.mxu0 %v1077_v8  ;;  %v1081_v25 = vld [vmem:[#allocation5 + $0x48] sm:$0xff]  ;;  %v1080_v29 = vld [vmem:[#allocation5 + $0x40] sm:$0xff]  ;;  %v62_v36 = vld [vmem:[#allocation2 + $0x10] sm:$0xff] }
  0x18   :  { %643 = vmatpush.bf16.msra.mxu1 %v1085_v9  ;;  %v1089_v26 = vld [vmem:[#allocation5 + $0x88] sm:$0xff]  ;;  %v60_v30 = vld [vmem:[#allocation2] sm:$0xff]  ;;  %v70_v37 = vld [vmem:[#allocation2 + $0x50] sm:$0xff] }
  0x19   :  { %662 = vmatpush.bf16.msra.mxu2 %v1093_v10  ;;  %v1097_v27 = vld [vmem:[#allocation5 + $0xc8] sm:$0xff]  ;;  %v1088_v31 = vld [vmem:[#allocation5 + $0x80] sm:$0xff]  ;;  %v63_v38 = vld [vmem:[#allocation2 + $0x18] sm:$0xff]  ;;  %v94_v44 = vpack.c.bf16 %v70_v37, %v62_v36 }
  0x1a   :  { %681 = vmatpush.bf16.msra.mxu3 %v1101_v11  ;;  %v1096_v32 = vld [vmem:[#allocation5 + $0xc0] sm:$0xff]  ;;  %v61_v34 = vld [vmem:[#allocation2 + $0x8] sm:$0xff]  ;;  %v71_v39 = vld [vmem:[#allocation2 + $0x58] sm:$0xff] }
  0x1b   :  { %625 = vmatpush.bf16.msra.mxu0 %v1076_v12  ;;  %v68_v33 = vld [vmem:[#allocation2 + $0x40] sm:$0xff]  ;;  %v69_v35 = vld [vmem:[#allocation2 + $0x48] sm:$0xff]  ;;  %v1127_v40 = vld [vmem:[#allocation5 + $0x1b8] sm:$0xff]  ;;  %v95_v45 = vpack.c.bf16 %v71_v39, %v63_v38 }
  0x1c   :  { %644 = vmatpush.bf16.msra.mxu1 %v1084_v13  ;;  %v1111_v41 = vld [vmem:[#allocation5 + $0x138] sm:$0xff]  ;;  %v92_v42 = vpack.c.bf16 %v68_v33, %v60_v30  ;;  %v93_v43 = vpack.c.bf16 %v69_v35, %v61_v34  ;;  %v1126_v48 = vld [vmem:[#allocation5 + $0x1b0] sm:$0xff]  ;;  %v1125_v52 = vld [vmem:[#allocation5 + $0x1a8] sm:$0xff] }
  0x1d   :  { %663 = vmatpush.bf16.msra.mxu2 %v1092_v14  ;;  %v1119_v46 = vld [vmem:[#allocation5 + $0x178] sm:$0xff]  ;;  %v1110_v49 = vld [vmem:[#allocation5 + $0x130] sm:$0xff]  ;;  %v1109_v53 = vld [vmem:[#allocation5 + $0x128] sm:$0xff] }
  0x1e   :  { %682 = vmatpush.bf16.msra.mxu3 %v1100_v15  ;;  %v1135_v47 = vld [vmem:[#allocation5 + $0x1f8] sm:$0xff]  ;;  %v1118_v50 = vld [vmem:[#allocation5 + $0x170] sm:$0xff]  ;;  %v1117_v54 = vld [vmem:[#allocation5 + $0x168] sm:$0xff] }
  0x1f   :  { %626 = vmatpush.bf16.msra.mxu0 %v1075_v16  ;;  %v1134_v51 = vld [vmem:[#allocation5 + $0x1f0] sm:$0xff]  ;;  %v1133_v55 = vld [vmem:[#allocation5 + $0x1e8] sm:$0xff]  ;;  %v1124_v56 = vld [vmem:[#allocation5 + $0x1a0] sm:$0xff] }
  0x20   :  { %645 = vmatpush.bf16.msra.mxu1 %v1083_v17  ;;  %v1108_v57 = vld [vmem:[#allocation5 + $0x120] sm:$0xff]  ;;  %v77_v62 = vld [vmem:[#allocation2 + $0x88] sm:$0xff]  ;;  %v78_v0 = vld [vmem:[#allocation2 + $0x90] sm:$0xff] }
  0x21   :  { %664 = vmatpush.bf16.msra.mxu2 %v1091_v18  ;;  %v1116_v58 = vld [vmem:[#allocation5 + $0x160] sm:$0xff]  ;;  %v85_v63 = vld [vmem:[#allocation2 + $0xc8] sm:$0xff]  ;;  %v86_v1 = vld [vmem:[#allocation2 + $0xd0] sm:$0xff] }
  0x22   :  { %683 = vmatpush.bf16.msra.mxu3 %v1099_v19  ;;  %v1132_v59 = vld [vmem:[#allocation5 + $0x1e0] sm:$0xff]  ;;  %v79_v2 = vld [vmem:[#allocation2 + $0x98] sm:$0xff]  ;;  %v101_v7 = vpack.c.bf16 %v85_v63, %v77_v62  ;;  %v102_v8 = vpack.c.bf16 %v86_v1, %v78_v0  ;;  %v1122_v12 = vld [vmem:[#allocation5 + $0x190] sm:$0xff] }
  0x23   :  { %627 = vmatpush.bf16.msra.mxu0 %v1074_v20  ;;  %v76_v60 = vld [vmem:[#allocation2 + $0x80] sm:$0xff]  ;;  %v87_v3 = vld [vmem:[#allocation2 + $0xd8] sm:$0xff]  ;;  %v1106_v13 = vld [vmem:[#allocation5 + $0x110] sm:$0xff] }
  0x24   :  { %646 = vmatpush.bf16.msra.mxu1 %v1082_v21  ;;  %v84_v61 = vld [vmem:[#allocation2 + $0xc0] sm:$0xff]  ;;  %v1123_v4 = vld [vmem:[#allocation5 + $0x198] sm:$0xff]  ;;  %v103_v9 = vpack.c.bf16 %v87_v3, %v79_v2  ;;  %v1114_v14 = vld [vmem:[#allocation5 + $0x150] sm:$0xff] }
  0x25   :  { %665 = vmatpush.bf16.msra.mxu2 %v1090_v22  ;;  %v1107_v5 = vld [vmem:[#allocation5 + $0x118] sm:$0xff]  ;;  %v100_v6 = vpack.c.bf16 %v84_v61, %v76_v60  ;;  %v1130_v15 = vld [vmem:[#allocation5 + $0x1d0] sm:$0xff]  ;;  %v1121_v16 = vld [vmem:[#allocation5 + $0x188] sm:$0xff] }
  0x26   :  { %684 = vmatpush.bf16.msra.mxu3 %v1098_v23  ;;  %v1115_v10 = vld [vmem:[#allocation5 + $0x158] sm:$0xff]  ;;  %v1105_v17 = vld [vmem:[#allocation5 + $0x108] sm:$0xff]  ;;  %v1120_v20 = vld [vmem:[#allocation5 + $0x180] sm:$0xff] }
  0x27   :  { %628 = vmatpush.bf16.msra.mxu0 %v1073_v24  ;;  %v1131_v11 = vld [vmem:[#allocation5 + $0x1d8] sm:$0xff]  ;;  %v1113_v18 = vld [vmem:[#allocation5 + $0x148] sm:$0xff]  ;;  %v1104_v21 = vld [vmem:[#allocation5 + $0x100] sm:$0xff] }
  0x28   :  { %647 = vmatpush.bf16.msra.mxu1 %v1081_v25  ;;  %v1129_v19 = vld [vmem:[#allocation5 + $0x1c8] sm:$0xff]  ;;  %v1112_v22 = vld [vmem:[#allocation5 + $0x140] sm:$0xff]  ;;  %v67_v30 = vld [vmem:[#allocation2 + $0x38] sm:$0xff] }
  0x29   :  { %666 = vmatpush.bf16.msra.mxu2 %v1089_v26  ;;  %v1128_v23 = vld [vmem:[#allocation5 + $0x1c0] sm:$0xff]  ;;  %v65_v26 = vld [vmem:[#allocation2 + $0x28] sm:$0xff] }
  0x2a   :  { %685 = vmatpush.bf16.msra.mxu3 %v1097_v27  ;;  %v64_v24 = vld [vmem:[#allocation2 + $0x20] sm:$0xff]  ;;  %v73_v27 = vld [vmem:[#allocation2 + $0x68] sm:$0xff] }
  0x2b   :  { %629 = vmatpush.bf16.msra.mxu0 %v1072_v28  ;;  %v72_v25 = vld [vmem:[#allocation2 + $0x60] sm:$0xff]  ;;  %v66_v28 = vld [vmem:[#allocation2 + $0x30] sm:$0xff]  ;;  %v97_v33 = vpack.c.bf16 %v73_v27, %v65_v26  ;;  %v81_v38 = vld [vmem:[#allocation2 + $0xa8] sm:$0xff] }
  0x2c   :  { %648 = vmatpush.bf16.msra.mxu1 %v1080_v29  ;;  %v74_v29 = vld [vmem:[#allocation2 + $0x70] sm:$0xff]  ;;  %v80_v36 = vld [vmem:[#allocation2 + $0xa0] sm:$0xff]  ;;  %v89_v39 = vld [vmem:[#allocation2 + $0xe8] sm:$0xff] }
  0x2d   :  { %667 = vmatpush.bf16.msra.mxu2 %v1088_v31  ;;  %v75_v31 = vld [vmem:[#allocation2 + $0x78] sm:$0xff]  ;;  %v98_v34 = vpack.c.bf16 %v74_v29, %v66_v28  ;;  %v88_v37 = vld [vmem:[#allocation2 + $0xe0] sm:$0xff] }
  0x2e   :  { %686 = vmatpush.bf16.msra.mxu3 %v1096_v32  ;;  %630 = vmatmul.bf16.vlgmr.msra.gmra.mxu0 %v92_v42  ;;  %v96_v32 = vpack.c.bf16 %v72_v25, %v64_v24  ;;  %v99_v35 = vpack.c.bf16 %v75_v31, %v67_v30  ;;  %v83_v42 = vld [vmem:[#allocation2 + $0xb8] sm:$0xff] }
  0x2f   :  { %698 = vmatpush.bf16.msrb.mxu0 %v1111_v41  ;;  %649 = vmatmul.bf16.vlgmr.msra.gmra.mxu1 %v93_v43  ;;  %v90_v41 = vld [vmem:[#allocation2 + $0xf0] sm:$0xff]  ;;  %v91_v43 = vld [vmem:[#allocation2 + $0xf8] sm:$0xff] }
  0x30   :  { %668 = vmatmul.bf16.vlgmr.msra.gmra.mxu2 %v94_v44  ;;  %717 = vmatpush.bf16.msrb.mxu1 %v1119_v46  ;;  %v104_v44 = vpack.c.bf16 %v88_v37, %v80_v36 }
  0x31   :  { %736 = vmatpush.bf16.msrb.mxu2 %v1127_v40  ;;  %687 = vmatmul.bf16.vlgmr.msra.gmra.mxu3 %v95_v45  ;;  %v82_v40 = vld [vmem:[#allocation2 + $0xb0] sm:$0xff]  ;;  %v105_v45 = vpack.c.bf16 %v89_v39, %v81_v38 }
  0x32   :  { %755 = vmatpush.bf16.msrb.mxu3 %v1135_v47  ;;  %v106_v46 = vpack.c.bf16 %v90_v41, %v82_v40  ;;  %v107_v47 = vpack.c.bf16 %v91_v43, %v83_v42 }
  0x33   :  { %699 = vmatpush.bf16.msrb.mxu0 %v1110_v49 }
  0x34   :  { %718 = vmatpush.bf16.msrb.mxu1 %v1118_v50 }
  0x35   :  { %737 = vmatpush.bf16.msrb.mxu2 %v1126_v48 }
  0x36   :  { %756 = vmatpush.bf16.msrb.mxu3 %v1134_v51 }
  0x37   :  { %700 = vmatpush.bf16.msrb.mxu0 %v1109_v53 }
  0x38   :  { %719 = vmatpush.bf16.msrb.mxu1 %v1117_v54 }
  0x39   :  { %738 = vmatpush.bf16.msrb.mxu2 %v1125_v52 }
  0x3a   :  { %757 = vmatpush.bf16.msrb.mxu3 %v1133_v55 }
  0x3b   :  { %701 = vmatpush.bf16.msrb.mxu0 %v1108_v57 }
  0x3c   :  { %720 = vmatpush.bf16.msrb.mxu1 %v1116_v58 }
  0x3d   :  { %739 = vmatpush.bf16.msrb.mxu2 %v1124_v56  ;;  %v1145_v56 = vld [vmem:[#allocation7] ss:$0 sm:$0xff] }
  0x3e   :  { %758 = vmatpush.bf16.msrb.mxu3 %v1132_v59  ;;  %635 = vmatmul.bf16.gmra.mxu0 %v100_v6 }
  0x3f   :  { %702 = vmatpush.bf16.msrb.mxu0 %v1107_v5  ;;  %654 = vmatmul.bf16.gmra.mxu1 %v101_v7 }
  0x40   :  { %673 = vmatmul.bf16.gmra.mxu2 %v102_v8  ;;  %721 = vmatpush.bf16.msrb.mxu1 %v1115_v10 }
  0x41   :  { %740 = vmatpush.bf16.msrb.mxu2 %v1123_v4  ;;  %692 = vmatmul.bf16.gmra.mxu3 %v103_v9 }
  0x42   :  { %759 = vmatpush.bf16.msrb.mxu3 %v1131_v11 }
  0x43   :  { %703 = vmatpush.bf16.msrb.mxu0 %v1106_v13 }
  0x44   :  { %722 = vmatpush.bf16.msrb.mxu1 %v1114_v14 }
  0x45   :  { %741 = vmatpush.bf16.msrb.mxu2 %v1122_v12 }
  0x46   :  { %760 = vmatpush.bf16.msrb.mxu3 %v1130_v15 }
  0x47   :  { %704 = vmatpush.bf16.msrb.mxu0 %v1105_v17 }
  0x48   :  { %723 = vmatpush.bf16.msrb.mxu1 %v1113_v18 }
  0x49   :  { %742 = vmatpush.bf16.msrb.mxu2 %v1121_v16 }
  0x4a   :  { %761 = vmatpush.bf16.msrb.mxu3 %v1129_v19 }
  0x4b   :  { %705 = vmatpush.bf16.msrb.mxu0 %v1104_v21 }
  0x4c   :  { %724 = vmatpush.bf16.msrb.mxu1 %v1112_v22  ;;  %v1146_v22 = vld [vmem:[#allocation7 + $0x1] ss:$0 sm:$0xff] }
  0x4d   :  { %743 = vmatpush.bf16.msrb.mxu2 %v1120_v20 }
  0x4e   :  { %762 = vmatpush.bf16.msrb.mxu3 %v1128_v23  ;;  %706 = vmatmul.bf16.vlgmr.msrb.gmra.mxu0 %v96_v32 }
  0x4f   :  { %725 = vmatmul.bf16.vlgmr.msrb.gmra.mxu1 %v97_v33 }
  0x50   :  { %744 = vmatmul.bf16.vlgmr.msrb.gmra.mxu2 %v98_v34 }
  0x51   :  { %763 = vmatmul.bf16.vlgmr.msrb.gmra.mxu3 %v99_v35 }
  0x5e   :  { %711 = vmatmul.bf16.gmra.mxu0 %v104_v44 }
  0x5f   :  { %730 = vmatmul.bf16.gmra.mxu1 %v105_v45 }
  0x60   :  { %749 = vmatmul.bf16.gmra.mxu2 %v106_v46 }
  0x61   :  { %768 = vmatmul.bf16.gmra.mxu3 %v107_v47 }
  0xab   :  { %v631_v48 = vpop.f32.mrf.mxu0 }
  0xac   :  { %v650_v49 = vpop.f32.mrf.mxu1  ;;  %v632_v59 = vadd.f32 %v1145_v56, %v631_v48 }
  0xae   :  { %v651_v62 = vadd.f32 %v650_v49, %v632_v59 }
  0xb3   :  { %v669_v50 = vpop.f32.mrf.mxu2  ;;  %v633_v52 = vpop.f32.mrf.mxu0 }
  0xb4   :  { %v688_v51 = vpop.f32.mrf.mxu3  ;;  %v652_v53 = vpop.f32.mrf.mxu1  ;;  %v670_v1 = vadd.f32 %v669_v50, %v651_v62  ;;  %v634_v2 = vadd.f32 %v1145_v56, %v633_v52 }
  0xb6   :  { %v689_v5 = vadd.f32 %v688_v51, %v670_v1  ;;  %v653_v8 = vadd.f32 %v652_v53, %v634_v2 }
  0xbb   :  { %v671_v54 = vpop.f32.mrf.mxu2  ;;  %v636_v57 = vpop.f32.mrf.mxu0 }
  0xbc   :  { %v690_v55 = vpop.f32.mrf.mxu3  ;;  %v655_v58 = vpop.f32.mrf.mxu1  ;;  %v672_v10 = vadd.f32 %v671_v54, %v653_v8  ;;  %v637_v11 = vadd.f32 %v1145_v56, %v636_v57 }
  0xbe   :  { %v691_v14 = vadd.f32 %v690_v55, %v672_v10  ;;  %v656_v15 = vadd.f32 %v655_v58, %v637_v11 }
  0xc3   :  { %v674_v60 = vpop.f32.mrf.mxu2  ;;  %v638_v63 = vpop.f32.mrf.mxu0 }
  0xc4   :  { %v693_v61 = vpop.f32.mrf.mxu3  ;;  %v657_v0 = vpop.f32.mrf.mxu1  ;;  %v675_v23 = vadd.f32 %v674_v60, %v656_v15  ;;  %v639_v25 = vadd.f32 %v1145_v56, %v638_v63 }
  0xc6   :  { %v694_v30 = vadd.f32 %v693_v61, %v675_v23  ;;  %v658_v34 = vadd.f32 %v657_v0, %v639_v25 }
  0xcb   :  { %v676_v3 = vpop.f32.mrf.mxu2  ;;  %v707_v6 = vpop.f32.mrf.mxu0 }
  0xcc   :  { %v695_v4 = vpop.f32.mrf.mxu3  ;;  %v726_v7 = vpop.f32.mrf.mxu1  ;;  %v708_v9 = vadd.f32 %v707_v6, %v689_v5  ;;  %v677_v38 = vadd.f32 %v676_v3, %v658_v34 }
  0xce   :  { %v727_v12 = vadd.f32 %v726_v7, %v708_v9  ;;  %v696_v44 = vadd.f32 %v695_v4, %v677_v38 }
  0xd3   :  { %v745_v13 = vpop.f32.mrf.mxu2  ;;  %v709_v18 = vpop.f32.mrf.mxu0 }
  0xd4   :  { %v746_v16 = vadd.f32 %v745_v13, %v727_v12  ;;  %v764_v17 = vpop.f32.mrf.mxu3  ;;  %v728_v19 = vpop.f32.mrf.mxu1  ;;  %v710_v21 = vadd.f32 %v709_v18, %v691_v14 }
  0xd6   :  { %v765_v20 = vadd.f32 %v764_v17, %v746_v16  ;;  %v729_v27 = vadd.f32 %v728_v19, %v710_v21 }
  0xd8   :  { %vm774_vm0 = vcmp.ge.f32.partialorder %v765_v20, 0.0  ;;  %v778_v24 = vmul.f32 0.2, %v765_v20 }
  0xda   :  { %v782_v26 = vsel %vm774_vm0, %v765_v20, %v778_v24 }
  0xdb   :  { %v788_v28 = vadd.f32 %v1146_v22, %v782_v26  ;;  %v747_v29 = vpop.f32.mrf.mxu2  ;;  %v712_v33 = vpop.f32.mrf.mxu0 }
  0xdc   :  { %v748_v31 = vadd.f32 %v747_v29, %v729_v27  ;;  %v766_v32 = vpop.f32.mrf.mxu3  ;;  %v713_v36 = vadd.f32 %v712_v33, %v694_v30  ;;  %v731_v37 = vpop.f32.mrf.mxu1 }
  0xdd   :  { %792 = vst [vmem:[#allocation8] sm:$0xff] %v788_v28 }
  0xde   :  { %v767_v35 = vadd.f32 %v766_v32, %v748_v31  ;;  %v732_v41 = vadd.f32 %v731_v37, %v713_v36 }
  0xe0   :  { %vm775_vm1 = vcmp.ge.f32.partialorder %v767_v35, 0.0  ;;  %v779_v39 = vmul.f32 0.2, %v767_v35 }
  0xe2   :  { %v783_v40 = vsel %vm775_vm1, %v767_v35, %v779_v39 }
  0xe3   :  { %v789_v42 = vadd.f32 %v1146_v22, %v783_v40  ;;  %v750_v43 = vpop.f32.mrf.mxu2  ;;  %v714_v47 = vpop.f32.mrf.mxu0 }
  0xe4   :  { %v751_v45 = vadd.f32 %v750_v43, %v732_v41  ;;  %v769_v46 = vpop.f32.mrf.mxu3  ;;  %v715_v49 = vadd.f32 %v714_v47, %v696_v44  ;;  %v733_v51 = vpop.f32.mrf.mxu1 }
  0xe5   :  { %793 = vst [vmem:[#allocation8 + $0x8] sm:$0xff] %v789_v42 }
  0xe6   :  { %v770_v48 = vadd.f32 %v769_v46, %v751_v45  ;;  %v734_v53 = vadd.f32 %v733_v51, %v715_v49 }
  0xe8   :  { %vm776_vm2 = vcmp.ge.f32.partialorder %v770_v48, 0.0  ;;  %v780_v50 = vmul.f32 0.2, %v770_v48 }
  0xea   :  { %v784_v52 = vsel %vm776_vm2, %v770_v48, %v780_v50 }
  0xeb   :  { %v790_v54 = vadd.f32 %v1146_v22, %v784_v52  ;;  %v752_v55 = vpop.f32.mrf.mxu2 }
  0xec   :  { %v753_v56 = vadd.f32 %v752_v55, %v734_v53  ;;  %v771_v57 = vpop.f32.mrf.mxu3 }
  0xed   :  { %794 = vst [vmem:[#allocation8 + $0x10] sm:$0xff] %v790_v54 }
  0xee   :  { %v772_v58 = vadd.f32 %v771_v57, %v753_v56 }
  0xf0   :  { %vm777_vm3 = vcmp.ge.f32.partialorder %v772_v58, 0.0  ;;  %v781_v59 = vmul.f32 0.2, %v772_v58 }
  0xf2   :  { %v785_v60 = vsel %vm777_vm3, %v772_v58, %v781_v59 }
  0xf3   :  { %v791_v61 = vadd.f32 %v1146_v22, %v785_v60 }
  0xf5   :  { %795 = vst [vmem:[#allocation8 + $0x18] sm:$0xff] %v791_v61 }
  0xf6   :  { %808 = dma.vmem_to_hbm [thread:$0]  %s801_s2, 512, %s803_s4, [#allocation4], %s1256_s5, %s1256_s5, %s1257_s6  }
  0xf7   :  { %1247 = dma.done.wait [#allocation4], 512  }
  0xf8   :  { %1248 = vsyncadd [#allocation4], 4294966784 }
  0xf9   :  { %813 = vsyncpa [#allocation3], 1 }
  0xfa   :  { %814 = vsyncpa [#allocation6], 1 }
  0xfb   :  { %815 = vsyncpa [#allocation4], 1 }

</bundles_post_ra>
